<compile_context>
chip_gen: v5e
topology: v5e:2x2
jax: 0.10.0
libtpu: 0.0.40
codegen_flags: <defaults>
</compile_context>

<pallas_src>
import jax
import jax.numpy as jnp
from jax.experimental import pallas as pl
from jax.experimental.pallas import tpu as pltpu


def _round_up(x, m):
    return ((x + m - 1) // m) * m


def _make_rnn_kernel(T, Bp, Hp):
    def kernel(x_ref, wih_ref, whh_ref, b_ref, wfc_ref, bfc_ref,
               out_ref, pre_ref, hs_ref):
        # ---- Phase 1: batched input projection for all timesteps (no recurrence).
        pre_ref[...] = (
            jnp.dot(x_ref[...], wih_ref[...], preferred_element_type=jnp.float32)
            + b_ref[...])                                    # (T*Bp, Hp) f32

        # ---- Phase 2: sequential tanh recurrence. Hoist invariant weight load.
        whh = whh_ref[...]                                   # (Hp, Hp)

        def step(t, h):
            r = pl.multiple_of(t * Bp, Bp)                   # aligned sublane offset
            p = pre_ref[pl.ds(r, Bp), :]                     # (Bp, Hp) f32
            h_new = jnp.tanh(
                p + jnp.dot(h.astype(whh.dtype), whh,
                            preferred_element_type=jnp.float32))
            hs_ref[pl.ds(r, Bp), :] = h_new
            return h_new

        jax.lax.fori_loop(0, T, step, jnp.zeros((Bp, Hp), jnp.float32),
                          unroll=True)

        # ---- Phase 3: FC epilogue over all timesteps as one lane-dense matmul.
        out_ref[...] = (
            jnp.dot(hs_ref[...].astype(wfc_ref.dtype), wfc_ref[...],
                    preferred_element_type=jnp.float32)
            + bfc_ref[...]).astype(out_ref.dtype)

    return kernel


def simple_rnn_forward(x_btd, w_ih, w_hh, b_ih, b_hh, w_fc, b_fc,
                       *, mxu_dtype=jnp.float32):
    """x_btd: (B, T, I) batch_first, like the PyTorch module.

    w_ih: (H, I), w_hh: (H, H), b_ih/b_hh: (H,)  -- PyTorch nn.RNN layout
    w_fc: (O, H), b_fc: (O,)                     -- PyTorch nn.Linear layout
    mxu_dtype: jnp.float32 (exact) or jnp.bfloat16 (faster MXU inputs on v6e/v7x;
               accumulation and tanh/bias stay f32).
    Returns (B, T, O).
    """
    B, T, I = x_btd.shape
    H = w_hh.shape[0]
    O = w_fc.shape[0]

    # Pad to hardware-native tiles: batch -> sublane multiple, feature dims -> lane multiple.
    Bp = _round_up(B, 8)
    Ip = _round_up(I, 128)
    Hp = _round_up(H, 128)
    Op = _round_up(O, 128)

    # Time-major, zero-padded, flattened to (T*Bp, Ip).
    x_tbd = jnp.transpose(x_btd, (1, 0, 2)).astype(jnp.float32)          # (T, B, I)
    x_pad = jnp.zeros((T, Bp, Ip), jnp.float32).at[:, :B, :I].set(x_tbd)
    x_flat = x_pad.reshape(T * Bp, Ip).astype(mxu_dtype)

    wih_t = (jnp.zeros((Ip, Hp), jnp.float32)
             .at[:I, :H].set(jnp.transpose(w_ih).astype(jnp.float32))
             .astype(mxu_dtype))                                         # (Ip, Hp)
    whh_t = (jnp.zeros((Hp, Hp), jnp.float32)
             .at[:H, :H].set(jnp.transpose(w_hh).astype(jnp.float32))
             .astype(mxu_dtype))                                         # (Hp, Hp)
    b_rnn = (jnp.zeros((1, Hp), jnp.float32)
             .at[0, :H].set((b_ih + b_hh).astype(jnp.float32)))          # f32 bias
    wfc_t = (jnp.zeros((Hp, Op), jnp.float32)
             .at[:H, :O].set(jnp.transpose(w_fc).astype(jnp.float32))
             .astype(mxu_dtype))                                         # (Hp, Op)
    bfc = (jnp.zeros((1, Op), jnp.float32)
           .at[0, :O].set(b_fc.astype(jnp.float32)))                     # f32 bias

    out_flat = pl.pallas_call(
        _make_rnn_kernel(T, Bp, Hp),
        out_shape=jax.ShapeDtypeStruct((T * Bp, Op), jnp.float32),
        in_specs=[pl.BlockSpec(memory_space=pltpu.MemorySpace.VMEM)] * 6,
        out_specs=pl.BlockSpec(memory_space=pltpu.MemorySpace.VMEM),
        scratch_shapes=[
            pltpu.VMEM((T * Bp, Hp), jnp.float32),   # pre-activations (all timesteps)
            pltpu.VMEM((T * Bp, Hp), jnp.float32),   # hidden states (all timesteps)
        ],
    )(x_flat, wih_t, whh_t, b_rnn, wfc_t, bfc)

    out = out_flat.reshape(T, Bp, Op)[:, :B, :O]     # drop padding
    return jnp.transpose(out, (1, 0, 2))             # (B, T, O)


def _reference_forward(x, w_ih, w_hh, b_ih, b_hh, w_fc, b_fc):
    """Pure-JAX reference matching torch semantics (tanh RNN, batch_first)."""
    B, T, I = x.shape
    H = w_hh.shape[0]

    def step(h, x_t):
        h_new = jnp.tanh(x_t @ w_ih.T + b_ih + h @ w_hh.T + b_hh)
        return h_new, h_new

    _, hs = jax.lax.scan(step, jnp.zeros((B, H), jnp.float32),
                         jnp.transpose(x, (1, 0, 2)))
    hs = jnp.transpose(hs, (1, 0, 2))                # (B, T, H)
    return hs @ w_fc.T + b_fc


if __name__ == "__main__":
    # Module hyperparameters (small, consistent with the forward pass)
    batch, seq, input_size, hidden_size, output_size = 2, 8, 4, 32, 4

    key = jax.random.PRNGKey(0)
    k = jax.random.split(key, 7)
    scale = 1.0 / jnp.sqrt(jnp.float32(hidden_size))

    x = jax.random.normal(k[0], (batch, seq, input_size), jnp.float32)
    w_ih = jax.random.uniform(k[1], (hidden_size, input_size), jnp.float32, -scale, scale)
    w_hh = jax.random.uniform(k[2], (hidden_size, hidden_size), jnp.float32, -scale, scale)
    b_ih = jax.random.uniform(k[3], (hidden_size,), jnp.float32, -scale, scale)
    b_hh = jax.random.uniform(k[4], (hidden_size,), jnp.float32, -scale, scale)
    w_fc = jax.random.uniform(k[5], (output_size, hidden_size), jnp.float32, -scale, scale)
    b_fc = jax.random.uniform(k[6], (output_size,), jnp.float32, -scale, scale)

    ref = _reference_forward(x, w_ih, w_hh, b_ih, b_hh, w_fc, b_fc)

    # Exact f32 path.
    out = simple_rnn_forward(x, w_ih, w_hh, b_ih, b_hh, w_fc, b_fc)
    out = jax.block_until_ready(out)
    assert out.shape == (batch, seq, output_size)
    assert jnp.allclose(out, ref, atol=1e-5, rtol=1e-5), "f32 kernel mismatch vs reference"

    # bf16 MXU-input path (v6e/v7x recommendation); accumulation / tanh stay f32.
    out_bf16 = jax.block_until_ready(
        simple_rnn_forward(x, w_ih, w_hh, b_ih, b_hh, w_fc, b_fc,
                           mxu_dtype=jnp.bfloat16))
    assert out_bf16.shape == (batch, seq, output_size)
    assert float(jnp.max(jnp.abs(out_bf16 - ref))) < 1e-1, "bf16 kernel too far from reference"

    print("KERNEL_OK")
</pallas_src>

<mosaic_0001>
module attributes {stable_mosaic.version = 11 : i64} {
  func.func @kernel(%arg0: memref<64x128xf32, #tpu.memory_space<vmem>>, %arg1: memref<128x128xf32, #tpu.memory_space<vmem>>, %arg2: memref<128x128xf32, #tpu.memory_space<vmem>>, %arg3: memref<1x128xf32, #tpu.memory_space<vmem>>, %arg4: memref<128x128xf32, #tpu.memory_space<vmem>>, %arg5: memref<1x128xf32, #tpu.memory_space<vmem>>, %arg6: memref<64x128xf32, #tpu.memory_space<vmem>>, %arg7: memref<64x128xf32, #tpu.memory_space<vmem>>, %arg8: memref<64x128xf32, #tpu.memory_space<vmem>>) attributes {dimension_semantics = [], scalar_prefetch = 0 : i64, scratch_operands = 2 : i64, tpu.core_type = #tpu.core_type<tc>} {
    %c0 = arith.constant 0 : index
    %c0_0 = arith.constant 0 : index
    %0 = vector.load %arg0[%c0, %c0_0] : memref<64x128xf32, #tpu.memory_space<vmem>>, vector<64x128xf32>
    %c0_1 = arith.constant 0 : index
    %c0_2 = arith.constant 0 : index
    %1 = vector.load %arg1[%c0_1, %c0_2] : memref<128x128xf32, #tpu.memory_space<vmem>>, vector<128x128xf32>
    %cst = arith.constant dense<0.000000e+00> : vector<64x128xf32>
    %2 = tpu.matmul %0, %1, %cst {dimension_numbers = #tpu.dot_dimension_numbers<[1], [0], [0], [1], [0, 0, 1, 1], [], []>} : vector<64x128xf32>, vector<128x128xf32>, vector<64x128xf32> -> vector<64x128xf32>
    %c0_3 = arith.constant 0 : index
    %c0_4 = arith.constant 0 : index
    %3 = vector.load %arg3[%c0_3, %c0_4] : memref<1x128xf32, #tpu.memory_space<vmem>>, vector<1x128xf32>
    %4 = vector.broadcast %3 : vector<1x128xf32> to vector<64x128xf32>
    %5 = arith.addf %2, %4 : vector<64x128xf32>
    %c0_5 = arith.constant 0 : index
    %c0_6 = arith.constant 0 : index
    %6 = vector.load %arg7[%c0_5, %c0_6] : memref<64x128xf32, #tpu.memory_space<vmem>>, vector<64x128xf32>
    tpu.vector_store %arg7[%c0_5, %c0_6], %5 {strides = array<i32>} : memref<64x128xf32, #tpu.memory_space<vmem>>, vector<64x128xf32>,
    %c0_7 = arith.constant 0 : index
    %c0_8 = arith.constant 0 : index
    %7 = vector.load %arg2[%c0_7, %c0_8] : memref<128x128xf32, #tpu.memory_space<vmem>>, vector<128x128xf32>
    %cst_9 = arith.constant 0.000000e+00 : f32
    %8 = vector.broadcast %cst_9 : f32 to vector<8x128xf32>
    %c0_i32 = arith.constant 0 : i32
    %c8_i32 = arith.constant 8 : i32
    %9 = arith.muli %c0_i32, %c8_i32 : i32
    %10 = tpu.assume_multiple %9, 8 : i32
    %11 = arith.index_cast %10 : i32 to index
    %c0_10 = arith.constant 0 : index
    %12 = vector.load %arg7[%11, %c0_10] : memref<64x128xf32, #tpu.memory_space<vmem>>, vector<8x128xf32>
    %cst_11 = arith.constant dense<0.000000e+00> : vector<8x128xf32>
    %13 = tpu.matmul %8, %7, %cst_11 {dimension_numbers = #tpu.dot_dimension_numbers<[1], [0], [0], [1], [0, 0, 1, 1], [], []>} : vector<8x128xf32>, vector<128x128xf32>, vector<8x128xf32> -> vector<8x128xf32>
    %14 = arith.addf %12, %13 : vector<8x128xf32>
    %15 = math.tanh %14 : vector<8x128xf32>
    %16 = arith.index_cast %10 : i32 to index
    %c0_12 = arith.constant 0 : index
    %17 = vector.load %arg8[%16, %c0_12] : memref<64x128xf32, #tpu.memory_space<vmem>>, vector<8x128xf32>
    tpu.vector_store %arg8[%16, %c0_12], %15 {strides = array<i32>} : memref<64x128xf32, #tpu.memory_space<vmem>>, vector<8x128xf32>,
    %c1_i32 = arith.constant 1 : i32
    %c8_i32_13 = arith.constant 8 : i32
    %18 = arith.muli %c1_i32, %c8_i32_13 : i32
    %19 = tpu.assume_multiple %18, 8 : i32
    %20 = arith.index_cast %19 : i32 to index
    %c0_14 = arith.constant 0 : index
    %21 = vector.load %arg7[%20, %c0_14] : memref<64x128xf32, #tpu.memory_space<vmem>>, vector<8x128xf32>
    %cst_15 = arith.constant dense<0.000000e+00> : vector<8x128xf32>
    %22 = tpu.matmul %15, %7, %cst_15 {dimension_numbers = #tpu.dot_dimension_numbers<[1], [0], [0], [1], [0, 0, 1, 1], [], []>} : vector<8x128xf32>, vector<128x128xf32>, vector<8x128xf32> -> vector<8x128xf32>
    %23 = arith.addf %21, %22 : vector<8x128xf32>
    %24 = math.tanh %23 : vector<8x128xf32>
    %25 = arith.index_cast %19 : i32 to index
    %c0_16 = arith.constant 0 : index
    %26 = vector.load %arg8[%25, %c0_16] : memref<64x128xf32, #tpu.memory_space<vmem>>, vector<8x128xf32>
    tpu.vector_store %arg8[%25, %c0_16], %24 {strides = array<i32>} : memref<64x128xf32, #tpu.memory_space<vmem>>, vector<8x128xf32>,
    %c2_i32 = arith.constant 2 : i32
    %c8_i32_17 = arith.constant 8 : i32
    %27 = arith.muli %c2_i32, %c8_i32_17 : i32
    %28 = tpu.assume_multiple %27, 8 : i32
    %29 = arith.index_cast %28 : i32 to index
    %c0_18 = arith.constant 0 : index
    %30 = vector.load %arg7[%29, %c0_18] : memref<64x128xf32, #tpu.memory_space<vmem>>, vector<8x128xf32>
    %cst_19 = arith.constant dense<0.000000e+00> : vector<8x128xf32>
    %31 = tpu.matmul %24, %7, %cst_19 {dimension_numbers = #tpu.dot_dimension_numbers<[1], [0], [0], [1], [0, 0, 1, 1], [], []>} : vector<8x128xf32>, vector<128x128xf32>, vector<8x128xf32> -> vector<8x128xf32>
    %32 = arith.addf %30, %31 : vector<8x128xf32>
    %33 = math.tanh %32 : vector<8x128xf32>
    %34 = arith.index_cast %28 : i32 to index
    %c0_20 = arith.constant 0 : index
    %35 = vector.load %arg8[%34, %c0_20] : memref<64x128xf32, #tpu.memory_space<vmem>>, vector<8x128xf32>
    tpu.vector_store %arg8[%34, %c0_20], %33 {strides = array<i32>} : memref<64x128xf32, #tpu.memory_space<vmem>>, vector<8x128xf32>,
    %c3_i32 = arith.constant 3 : i32
    %c8_i32_21 = arith.constant 8 : i32
    %36 = arith.muli %c3_i32, %c8_i32_21 : i32
    %37 = tpu.assume_multiple %36, 8 : i32
    %38 = arith.index_cast %37 : i32 to index
    %c0_22 = arith.constant 0 : index
    %39 = vector.load %arg7[%38, %c0_22] : memref<64x128xf32, #tpu.memory_space<vmem>>, vector<8x128xf32>
    %cst_23 = arith.constant dense<0.000000e+00> : vector<8x128xf32>
    %40 = tpu.matmul %33, %7, %cst_23 {dimension_numbers = #tpu.dot_dimension_numbers<[1], [0], [0], [1], [0, 0, 1, 1], [], []>} : vector<8x128xf32>, vector<128x128xf32>, vector<8x128xf32> -> vector<8x128xf32>
    %41 = arith.addf %39, %40 : vector<8x128xf32>
    %42 = math.tanh %41 : vector<8x128xf32>
    %43 = arith.index_cast %37 : i32 to index
    %c0_24 = arith.constant 0 : index
    %44 = vector.load %arg8[%43, %c0_24] : memref<64x128xf32, #tpu.memory_space<vmem>>, vector<8x128xf32>
    tpu.vector_store %arg8[%43, %c0_24], %42 {strides = array<i32>} : memref<64x128xf32, #tpu.memory_space<vmem>>, vector<8x128xf32>,
    %c4_i32 = arith.constant 4 : i32
    %c8_i32_25 = arith.constant 8 : i32
    %45 = arith.muli %c4_i32, %c8_i32_25 : i32
    %46 = tpu.assume_multiple %45, 8 : i32
    %47 = arith.index_cast %46 : i32 to index
    %c0_26 = arith.constant 0 : index
    %48 = vector.load %arg7[%47, %c0_26] : memref<64x128xf32, #tpu.memory_space<vmem>>, vector<8x128xf32>
    %cst_27 = arith.constant dense<0.000000e+00> : vector<8x128xf32>
    %49 = tpu.matmul %42, %7, %cst_27 {dimension_numbers = #tpu.dot_dimension_numbers<[1], [0], [0], [1], [0, 0, 1, 1], [], []>} : vector<8x128xf32>, vector<128x128xf32>, vector<8x128xf32> -> vector<8x128xf32>
    %50 = arith.addf %48, %49 : vector<8x128xf32>
    %51 = math.tanh %50 : vector<8x128xf32>
    %52 = arith.index_cast %46 : i32 to index
    %c0_28 = arith.constant 0 : index
    %53 = vector.load %arg8[%52, %c0_28] : memref<64x128xf32, #tpu.memory_space<vmem>>, vector<8x128xf32>
    tpu.vector_store %arg8[%52, %c0_28], %51 {strides = array<i32>} : memref<64x128xf32, #tpu.memory_space<vmem>>, vector<8x128xf32>,
    %c5_i32 = arith.constant 5 : i32
    %c8_i32_29 = arith.constant 8 : i32
    %54 = arith.muli %c5_i32, %c8_i32_29 : i32
    %55 = tpu.assume_multiple %54, 8 : i32
    %56 = arith.index_cast %55 : i32 to index
    %c0_30 = arith.constant 0 : index
    %57 = vector.load %arg7[%56, %c0_30] : memref<64x128xf32, #tpu.memory_space<vmem>>, vector<8x128xf32>
    %cst_31 = arith.constant dense<0.000000e+00> : vector<8x128xf32>
    %58 = tpu.matmul %51, %7, %cst_31 {dimension_numbers = #tpu.dot_dimension_numbers<[1], [0], [0], [1], [0, 0, 1, 1], [], []>} : vector<8x128xf32>, vector<128x128xf32>, vector<8x128xf32> -> vector<8x128xf32>
    %59 = arith.addf %57, %58 : vector<8x128xf32>
    %60 = math.tanh %59 : vector<8x128xf32>
    %61 = arith.index_cast %55 : i32 to index
    %c0_32 = arith.constant 0 : index
    %62 = vector.load %arg8[%61, %c0_32] : memref<64x128xf32, #tpu.memory_space<vmem>>, vector<8x128xf32>
    tpu.vector_store %arg8[%61, %c0_32], %60 {strides = array<i32>} : memref<64x128xf32, #tpu.memory_space<vmem>>, vector<8x128xf32>,
    %c6_i32 = arith.constant 6 : i32
    %c8_i32_33 = arith.constant 8 : i32
    %63 = arith.muli %c6_i32, %c8_i32_33 : i32
    %64 = tpu.assume_multiple %63, 8 : i32
    %65 = arith.index_cast %64 : i32 to index
    %c0_34 = arith.constant 0 : index
    %66 = vector.load %arg7[%65, %c0_34] : memref<64x128xf32, #tpu.memory_space<vmem>>, vector<8x128xf32>
    %cst_35 = arith.constant dense<0.000000e+00> : vector<8x128xf32>
    %67 = tpu.matmul %60, %7, %cst_35 {dimension_numbers = #tpu.dot_dimension_numbers<[1], [0], [0], [1], [0, 0, 1, 1], [], []>} : vector<8x128xf32>, vector<128x128xf32>, vector<8x128xf32> -> vector<8x128xf32>
    %68 = arith.addf %66, %67 : vector<8x128xf32>
    %69 = math.tanh %68 : vector<8x128xf32>
    %70 = arith.index_cast %64 : i32 to index
    %c0_36 = arith.constant 0 : index
    %71 = vector.load %arg8[%70, %c0_36] : memref<64x128xf32, #tpu.memory_space<vmem>>, vector<8x128xf32>
    tpu.vector_store %arg8[%70, %c0_36], %69 {strides = array<i32>} : memref<64x128xf32, #tpu.memory_space<vmem>>, vector<8x128xf32>,
    %c7_i32 = arith.constant 7 : i32
    %c8_i32_37 = arith.constant 8 : i32
    %72 = arith.muli %c7_i32, %c8_i32_37 : i32
    %73 = tpu.assume_multiple %72, 8 : i32
    %74 = arith.index_cast %73 : i32 to index
    %c0_38 = arith.constant 0 : index
    %75 = vector.load %arg7[%74, %c0_38] : memref<64x128xf32, #tpu.memory_space<vmem>>, vector<8x128xf32>
    %cst_39 = arith.constant dense<0.000000e+00> : vector<8x128xf32>
    %76 = tpu.matmul %69, %7, %cst_39 {dimension_numbers = #tpu.dot_dimension_numbers<[1], [0], [0], [1], [0, 0, 1, 1], [], []>} : vector<8x128xf32>, vector<128x128xf32>, vector<8x128xf32> -> vector<8x128xf32>
    %77 = arith.addf %75, %76 : vector<8x128xf32>
    %78 = math.tanh %77 : vector<8x128xf32>
    %79 = arith.index_cast %73 : i32 to index
    %c0_40 = arith.constant 0 : index
    %80 = vector.load %arg8[%79, %c0_40] : memref<64x128xf32, #tpu.memory_space<vmem>>, vector<8x128xf32>
    tpu.vector_store %arg8[%79, %c0_40], %78 {strides = array<i32>} : memref<64x128xf32, #tpu.memory_space<vmem>>, vector<8x128xf32>,
    %c8_i32_41 = arith.constant 8 : i32
    %c0_42 = arith.constant 0 : index
    %c0_43 = arith.constant 0 : index
    %81 = vector.load %arg8[%c0_42, %c0_43] : memref<64x128xf32, #tpu.memory_space<vmem>>, vector<64x128xf32>
    %c0_44 = arith.constant 0 : index
    %c0_45 = arith.constant 0 : index
    %82 = vector.load %arg4[%c0_44, %c0_45] : memref<128x128xf32, #tpu.memory_space<vmem>>, vector<128x128xf32>
    %cst_46 = arith.constant dense<0.000000e+00> : vector<64x128xf32>
    %83 = tpu.matmul %81, %82, %cst_46 {dimension_numbers = #tpu.dot_dimension_numbers<[1], [0], [0], [1], [0, 0, 1, 1], [], []>} : vector<64x128xf32>, vector<128x128xf32>, vector<64x128xf32> -> vector<64x128xf32>
    %c0_47 = arith.constant 0 : index
    %c0_48 = arith.constant 0 : index
    %84 = vector.load %arg5[%c0_47, %c0_48] : memref<1x128xf32, #tpu.memory_space<vmem>>, vector<1x128xf32>
    %85 = vector.broadcast %84 : vector<1x128xf32> to vector<64x128xf32>
    %86 = arith.addf %83, %85 : vector<64x128xf32>
    %c0_49 = arith.constant 0 : index
    %c0_50 = arith.constant 0 : index
    %87 = vector.load %arg6[%c0_49, %c0_50] : memref<64x128xf32, #tpu.memory_space<vmem>>, vector<64x128xf32>
    tpu.vector_store %arg6[%c0_49, %c0_50], %86 {strides = array<i32>} : memref<64x128xf32, #tpu.memory_space<vmem>>, vector<64x128xf32>,
    return
  }
}

</mosaic_0001>

<bundles_post_ra>
// kernel: tpu_custom_call.1
= control target key start
LH: loop header
LB: loop body
LE: loop exit
PB: predicated region body
PF: predicated region fallthrough
CT: control target
= control target key end

     0   :  { %11 = vsyncpa [#allocation5], 0  ;;  %s891_s0 = inlined_call_operand.hbm [shape: f32[64,128], index: 0, kind: input, shape index: {}]   ;;  %s892_s1 = inlined_call_operand.hbm [shape: f32[128,128], index: 1, kind: input, shape index: {}]   ;;  %s893_s2 = inlined_call_operand.hbm [shape: f32[128,128], index: 2, kind: input, shape index: {}]   ;;  %s894_s3 = inlined_call_operand.vmem [shape: f32[1,128], index: 3, kind: input, shape index: {}]   ;;  %s895_s4 = inlined_call_operand.hbm [shape: f32[128,128], index: 4, kind: input, shape index: {}]   ;;  %s896_s5 = inlined_call_operand.vmem [shape: f32[1,128], index: 5, kind: input, shape index: {}]   ;;  %s897_s6 = inlined_call_operand.hbm [shape: f32[64,128], index: 6, kind: output, shape index: {}]  }
   0x1   :  { %12 = vsyncpa [#allocation8], 0 }
   0x2   :  { %13 = vsyncpa [#allocation11], 0 }
   0x3   :  { %14 = vsyncpa [#allocation6], 0  ;;  %s32_s23 = sshll.u32 %s892_s1, 4  ;;  %s638_s24 = smov [#allocation7]   ;;  %s33_s23 = int_to_ptr.hbm [resolvable:$true] %s32_s23 }
   0x4   :  { %s34_s25 = sshll.u32 %s638_s24, 4  ;;  %s19_s28 = sshll.u32 %s891_s0, 4  ;;  %s35_s25 = int_to_ptr.vmem [resolvable:$true] %s34_s25  ;;  %s20_s28 = int_to_ptr.hbm [resolvable:$true] %s19_s28 }
   0x5   :  { %s639_s29 = smov 128   ;;  %s640_s30 = smov 8  }
   0x6   :  { %40 = dma.hbm_to_vmem [thread:$0]  %s33_s23, 2048, %s35_s25, [#allocation8], %s639_s29, %s639_s29, %s640_s30  }
   0x7   :  { %s641_s7 = smov [#allocation4]   ;;  %s45_s1 = sshll.u32 %s893_s2, 4  ;;  %s46_s1 = int_to_ptr.hbm [resolvable:$true] %s45_s1 }
   0x8   :  { %s21_s8 = sshll.u32 %s641_s7, 4  ;;  %s60_s12 = sshll.u32 %s895_s4, 4  ;;  %s22_s8 = int_to_ptr.vmem [resolvable:$true] %s21_s8  ;;  %s61_s12 = int_to_ptr.hbm [resolvable:$true] %s60_s12 }
   0x9   :  { %27 = dma.hbm_to_vmem [thread:$0]  %s20_s28, 1024, %s22_s8, [#allocation5], %s639_s29, %s639_s29, %s640_s30  }
   0xa   :  { %s642_s13 = smov [#allocation9]   ;;  %s643_s15 = smov [#allocation10]  }
   0xb   :  { %s47_s14 = sshll.u32 %s642_s13, 4  ;;  %s62_s2 = sshll.u32 %s643_s15, 4  ;;  %s48_s14 = int_to_ptr.vmem [resolvable:$true] %s47_s14  ;;  %s63_s2 = int_to_ptr.vmem [resolvable:$true] %s62_s2 }
   0xc   :  { %53 = dma.hbm_to_vmem [thread:$0]  %s46_s1, 2048, %s48_s14, [#allocation8], %s639_s29, %s639_s29, %s640_s30  }
   0xd   :  { %68 = dma.hbm_to_vmem [thread:$0]  %s61_s12, 2048, %s63_s2, [#allocation11], %s639_s29, %s639_s29, %s640_s30  }
   0xe   :  { %630 = dma.done.wait [#allocation5], 1024  }
   0xf   :  { %631 = vsyncadd [#allocation5], 4294966272 }
  0x10   :  { %632 = dma.done.wait [#allocation8], 4096  }
  0x11   :  { %633 = vsyncadd [#allocation8], 4294963200 }
  0x12   :  { %634 = dma.done.wait [#allocation11], 2048  }
  0x13   :  { %635 = vsyncadd [#allocation11], 4294965248  ;;  %v110_v0 = vld [vmem:[#allocation7 + $0x78] sm:$0xff]  ;;  %v109_v1 = vld [vmem:[#allocation7 + $0x70] sm:$0xff]  ;;  %v644_v33 = vmov 0.0   ;;  %s469_s21 = sshll.u32 %s897_s6, 4  ;;  %s470_s21 = int_to_ptr.hbm [resolvable:$true] %s469_s21 }
  0x14   :  { %v705_v2 = vld [vmem:[#allocation9 + $0x78] sm:$0xff]  ;;  %115 = vmatpush.msra.mxu0 %v110_v0  ;;  %v708_v3 = vld [vmem:[#allocation9 + $0x70] sm:$0xff]  ;;  %v108_v4 = vld [vmem:[#allocation7 + $0x68] sm:$0xff] }
  0x15   :  { %181 = vmatpush.msra.mxu1 %v705_v2  ;;  %v710_v5 = vld [vmem:[#allocation9 + $0x68] sm:$0xff]  ;;  %206 = vmatpush.msra.mxu3 %v705_v2  ;;  %v107_v6 = vld [vmem:[#allocation7 + $0x60] sm:$0xff]  ;;  %v106_v8 = vld [vmem:[#allocation7 + $0x58] sm:$0xff] }
  0x16   :  { %284 = vmatpush.msra.mxu2 %v705_v2  ;;  %116 = vmatpush.msra.mxu0 %v109_v1  ;;  %v715_v7 = vld [vmem:[#allocation9 + $0x60] sm:$0xff]  ;;  %v720_v9 = vld [vmem:[#allocation9 + $0x58] sm:$0xff]  ;;  %v105_v10 = vld [vmem:[#allocation7 + $0x50] sm:$0xff] }
  0x17   :  { %182 = vmatpush.msra.mxu1 %v708_v3  ;;  %207 = vmatpush.msra.mxu3 %v708_v3  ;;  %v725_v11 = vld [vmem:[#allocation9 + $0x50] sm:$0xff]  ;;  %v104_v12 = vld [vmem:[#allocation7 + $0x48] sm:$0xff]  ;;  %v103_v14 = vld [vmem:[#allocation7 + $0x40] sm:$0xff] }
  0x18   :  { %285 = vmatpush.msra.mxu2 %v708_v3  ;;  %117 = vmatpush.msra.mxu0 %v108_v4  ;;  %v730_v13 = vld [vmem:[#allocation9 + $0x48] sm:$0xff]  ;;  %v735_v15 = vld [vmem:[#allocation9 + $0x40] sm:$0xff]  ;;  %v102_v16 = vld [vmem:[#allocation7 + $0x38] sm:$0xff] }
  0x19   :  { %183 = vmatpush.msra.mxu1 %v710_v5  ;;  %208 = vmatpush.msra.mxu3 %v710_v5  ;;  %v740_v17 = vld [vmem:[#allocation9 + $0x38] sm:$0xff]  ;;  %v101_v18 = vld [vmem:[#allocation7 + $0x30] sm:$0xff]  ;;  %v100_v20 = vld [vmem:[#allocation7 + $0x28] sm:$0xff] }
  0x1a   :  { %286 = vmatpush.msra.mxu2 %v710_v5  ;;  %118 = vmatpush.msra.mxu0 %v107_v6  ;;  %v745_v19 = vld [vmem:[#allocation9 + $0x30] sm:$0xff]  ;;  %v750_v21 = vld [vmem:[#allocation9 + $0x28] sm:$0xff]  ;;  %v99_v22 = vld [vmem:[#allocation7 + $0x20] sm:$0xff] }
  0x1b   :  { %184 = vmatpush.msra.mxu1 %v715_v7  ;;  %209 = vmatpush.msra.mxu3 %v715_v7  ;;  %v755_v23 = vld [vmem:[#allocation9 + $0x20] sm:$0xff]  ;;  %v98_v24 = vld [vmem:[#allocation7 + $0x18] sm:$0xff]  ;;  %v97_v26 = vld [vmem:[#allocation7 + $0x10] sm:$0xff] }
  0x1c   :  { %287 = vmatpush.msra.mxu2 %v715_v7  ;;  %119 = vmatpush.msra.mxu0 %v106_v8  ;;  %v760_v25 = vld [vmem:[#allocation9 + $0x18] sm:$0xff]  ;;  %v765_v27 = vld [vmem:[#allocation9 + $0x10] sm:$0xff]  ;;  %v96_v28 = vld [vmem:[#allocation7 + $0x8] sm:$0xff] }
  0x1d   :  { %185 = vmatpush.msra.mxu1 %v720_v9  ;;  %210 = vmatpush.msra.mxu3 %v720_v9  ;;  %v770_v29 = vld [vmem:[#allocation9 + $0x8] sm:$0xff]  ;;  %v95_v30 = vld [vmem:[#allocation7] sm:$0xff]  ;;  %v89_v41 = vld [vmem:[#allocation4 + $0x10] sm:$0xff] }
  0x1e   :  { %288 = vmatpush.msra.mxu2 %v720_v9  ;;  %120 = vmatpush.msra.mxu0 %v105_v10  ;;  %v775_v31 = vld [vmem:[#allocation9] sm:$0xff]  ;;  %v88_v34 = vld [vmem:[#allocation4 + $0x8] sm:$0xff]  ;;  %v90_v47 = vld [vmem:[#allocation4 + $0x18] sm:$0xff] }
  0x1f   :  { %186 = vmatpush.msra.mxu1 %v725_v11  ;;  %211 = vmatpush.msra.mxu3 %v725_v11  ;;  %v87_v32 = vld [vmem:[#allocation4] sm:$0xff]  ;;  %v409_v48 = vld [vmem:[#allocation10 + $0x78] sm:$0xff]  ;;  %v408_v49 = vld [vmem:[#allocation10 + $0x70] sm:$0xff] }
  0x20   :  { %289 = vmatpush.msra.mxu2 %v725_v11  ;;  %121 = vmatpush.msra.mxu0 %v104_v12  ;;  %v852_v35 = vld [vmem:[%s894_s3] ss:$0 sm:$0xff]  ;;  %v407_v50 = vld [vmem:[#allocation10 + $0x68] sm:$0xff]  ;;  %v405_v52 = vld [vmem:[#allocation10 + $0x58] sm:$0xff] }
  0x21   :  { %187 = vmatpush.msra.mxu1 %v730_v13  ;;  %212 = vmatpush.msra.mxu3 %v730_v13  ;;  %v406_v51 = vld [vmem:[#allocation10 + $0x60] sm:$0xff]  ;;  %v404_v53 = vld [vmem:[#allocation10 + $0x50] sm:$0xff]  ;;  %v403_v59 = vld [vmem:[#allocation10 + $0x48] sm:$0xff] }
  0x22   :  { %290 = vmatpush.msra.mxu2 %v730_v13  ;;  %122 = vmatpush.msra.mxu0 %v103_v14  ;;  %v402_v60 = vld [vmem:[#allocation10 + $0x40] sm:$0xff]  ;;  %v401_v61 = vld [vmem:[#allocation10 + $0x38] sm:$0xff]  ;;  %v400_v62 = vld [vmem:[#allocation10 + $0x30] sm:$0xff] }
  0x23   :  { %188 = vmatpush.msra.mxu1 %v735_v15  ;;  %213 = vmatpush.msra.mxu3 %v735_v15  ;;  %v399_v63 = vld [vmem:[#allocation10 + $0x28] sm:$0xff]  ;;  %v398_v0 = vld [vmem:[#allocation10 + $0x20] sm:$0xff]  ;;  %v397_v1 = vld [vmem:[#allocation10 + $0x18] sm:$0xff] }
  0x24   :  { %291 = vmatpush.msra.mxu2 %v735_v15  ;;  %123 = vmatpush.msra.mxu0 %v102_v16  ;;  %v395_v4 = vld [vmem:[#allocation10 + $0x8] sm:$0xff]  ;;  %v93_v16 = vld [vmem:[#allocation4 + $0x30] sm:$0xff] }
  0x25   :  { %189 = vmatpush.msra.mxu1 %v740_v17  ;;  %214 = vmatpush.msra.mxu3 %v740_v17 }
  0x26   :  { %292 = vmatpush.msra.mxu2 %v740_v17  ;;  %124 = vmatpush.msra.mxu0 %v101_v18 }
  0x27   :  { %190 = vmatpush.msra.mxu1 %v745_v19  ;;  %215 = vmatpush.msra.mxu3 %v745_v19 }
  0x28   :  { %293 = vmatpush.msra.mxu2 %v745_v19  ;;  %125 = vmatpush.msra.mxu0 %v100_v20 }
  0x29   :  { %191 = vmatpush.msra.mxu1 %v750_v21  ;;  %216 = vmatpush.msra.mxu3 %v750_v21 }
  0x2a   :  { %294 = vmatpush.msra.mxu2 %v750_v21  ;;  %126 = vmatpush.msra.mxu0 %v99_v22 }
  0x2b   :  { %192 = vmatpush.msra.mxu1 %v755_v23  ;;  %217 = vmatpush.msra.mxu3 %v755_v23 }
  0x2c   :  { %295 = vmatpush.msra.mxu2 %v755_v23  ;;  %127 = vmatpush.msra.mxu0 %v98_v24 }
  0x2d   :  { %193 = vmatpush.msra.mxu1 %v760_v25  ;;  %218 = vmatpush.msra.mxu3 %v760_v25 }
  0x2e   :  { %296 = vmatpush.msra.mxu2 %v760_v25  ;;  %128 = vmatpush.msra.mxu0 %v97_v26 }
  0x2f   :  { %194 = vmatpush.msra.mxu1 %v765_v27  ;;  %219 = vmatpush.msra.mxu3 %v765_v27 }
  0x30   :  { %297 = vmatpush.msra.mxu2 %v765_v27  ;;  %129 = vmatpush.msra.mxu0 %v96_v28 }
  0x31   :  { %195 = vmatpush.msra.mxu1 %v770_v29  ;;  %220 = vmatpush.msra.mxu3 %v770_v29 }
  0x32   :  { %298 = vmatpush.msra.mxu2 %v770_v29  ;;  %130 = vmatpush.msra.mxu0 %v95_v30 }
  0x33   :  { %196 = vmatpush.msra.mxu1 %v775_v31  ;;  %131 = vmatmul.f32.vlgmr.msra.gmra.mxu0 %v87_v32 }
  0x34   :  { %197 = vmatmul.f32.vlgmr.msra.gmra.mxu1 %v644_v33  ;;  %221 = vmatpush.msra.mxu3 %v775_v31 }
  0x35   :  { %258 = vmatpush.msrb.mxu1 %v705_v2  ;;  %299 = vmatpush.msra.mxu2 %v775_v31 }
  0x36   :  { %232 = vmatpush.msrb.mxu3 %v705_v2  ;;  %336 = vmatpush.msrb.mxu0 %v705_v2 }
  0x37   :  { %259 = vmatpush.msrb.mxu1 %v708_v3  ;;  %414 = vmatpush.msrb.mxu2 %v409_v48 }
  0x38   :  { %233 = vmatpush.msrb.mxu3 %v708_v3  ;;  %337 = vmatpush.msrb.mxu0 %v708_v3 }
  0x39   :  { %260 = vmatpush.msrb.mxu1 %v710_v5  ;;  %415 = vmatpush.msrb.mxu2 %v408_v49 }
  0x3a   :  { %234 = vmatpush.msrb.mxu3 %v710_v5  ;;  %338 = vmatpush.msrb.mxu0 %v710_v5 }
  0x3b   :  { %261 = vmatpush.msrb.mxu1 %v715_v7  ;;  %134 = vmatmul.f32.gmra.mxu0 %v88_v34 }
  0x3c   :  { %235 = vmatpush.msrb.mxu3 %v715_v7  ;;  %339 = vmatpush.msrb.mxu0 %v715_v7 }
  0x3d   :  { %262 = vmatpush.msrb.mxu1 %v720_v9  ;;  %416 = vmatpush.msrb.mxu2 %v407_v50 }
  0x3e   :  { %236 = vmatpush.msrb.mxu3 %v720_v9  ;;  %340 = vmatpush.msrb.mxu0 %v720_v9 }
  0x3f   :  { %263 = vmatpush.msrb.mxu1 %v725_v11  ;;  %417 = vmatpush.msrb.mxu2 %v406_v51 }
  0x40   :  { %237 = vmatpush.msrb.mxu3 %v725_v11  ;;  %341 = vmatpush.msrb.mxu0 %v725_v11 }
  0x41   :  { %264 = vmatpush.msrb.mxu1 %v730_v13  ;;  %418 = vmatpush.msrb.mxu2 %v405_v52 }
  0x42   :  { %238 = vmatpush.msrb.mxu3 %v730_v13  ;;  %342 = vmatpush.msrb.mxu0 %v730_v13 }
  0x43   :  { %265 = vmatpush.msrb.mxu1 %v735_v15  ;;  %137 = vmatmul.f32.gmra.mxu0 %v89_v41 }
  0x44   :  { %239 = vmatpush.msrb.mxu3 %v735_v15  ;;  %343 = vmatpush.msrb.mxu0 %v735_v15 }
  0x45   :  { %266 = vmatpush.msrb.mxu1 %v740_v17  ;;  %419 = vmatpush.msrb.mxu2 %v404_v53 }
  0x46   :  { %240 = vmatpush.msrb.mxu3 %v740_v17  ;;  %344 = vmatpush.msrb.mxu0 %v740_v17 }
  0x47   :  { %267 = vmatpush.msrb.mxu1 %v745_v19  ;;  %420 = vmatpush.msrb.mxu2 %v403_v59 }
  0x48   :  { %241 = vmatpush.msrb.mxu3 %v745_v19  ;;  %345 = vmatpush.msrb.mxu0 %v745_v19 }
  0x49   :  { %268 = vmatpush.msrb.mxu1 %v750_v21  ;;  %421 = vmatpush.msrb.mxu2 %v402_v60 }
  0x4a   :  { %242 = vmatpush.msrb.mxu3 %v750_v21  ;;  %346 = vmatpush.msrb.mxu0 %v750_v21 }
  0x4b   :  { %269 = vmatpush.msrb.mxu1 %v755_v23  ;;  %140 = vmatmul.f32.gmra.mxu0 %v90_v47 }
  0x4c   :  { %243 = vmatpush.msrb.mxu3 %v755_v23  ;;  %347 = vmatpush.msrb.mxu0 %v755_v23 }
  0x4d   :  { %270 = vmatpush.msrb.mxu1 %v760_v25  ;;  %422 = vmatpush.msrb.mxu2 %v401_v61 }
  0x4e   :  { %244 = vmatpush.msrb.mxu3 %v760_v25  ;;  %348 = vmatpush.msrb.mxu0 %v760_v25 }
  0x4f   :  { %271 = vmatpush.msrb.mxu1 %v765_v27  ;;  %423 = vmatpush.msrb.mxu2 %v400_v62 }
  0x50   :  { %245 = vmatpush.msrb.mxu3 %v765_v27  ;;  %349 = vmatpush.msrb.mxu0 %v765_v27 }
  0x51   :  { %272 = vmatpush.msrb.mxu1 %v770_v29  ;;  %424 = vmatpush.msrb.mxu2 %v399_v63 }
  0x52   :  { %246 = vmatpush.msrb.mxu3 %v770_v29  ;;  %350 = vmatpush.msrb.mxu0 %v770_v29 }
  0x53   :  { %273 = vmatpush.msrb.mxu1 %v775_v31  ;;  %425 = vmatpush.msrb.mxu2 %v398_v0 }
  0x54   :  { %247 = vmatpush.msrb.mxu3 %v775_v31  ;;  %351 = vmatpush.msrb.mxu0 %v775_v31 }
  0x55   :  { %362 = vmatpush.msra.mxu1 %v705_v2  ;;  %426 = vmatpush.msrb.mxu2 %v397_v1 }
  0x57   :  { %363 = vmatpush.msra.mxu1 %v708_v3 }
  0x59   :  { %364 = vmatpush.msra.mxu1 %v710_v5 }
  0x5b   :  { %365 = vmatpush.msra.mxu1 %v715_v7 }
  0x5d   :  { %366 = vmatpush.msra.mxu1 %v720_v9 }
  0x5f   :  { %367 = vmatpush.msra.mxu1 %v725_v11 }
  0x61   :  { %368 = vmatpush.msra.mxu1 %v730_v13 }
  0x63   :  { %369 = vmatpush.msra.mxu1 %v735_v15 }
  0x65   :  { %370 = vmatpush.msra.mxu1 %v740_v17 }
  0x67   :  { %371 = vmatpush.msra.mxu1 %v745_v19 }
  0x69   :  { %372 = vmatpush.msra.mxu1 %v750_v21 }
  0x6b   :  { %373 = vmatpush.msra.mxu1 %v755_v23 }
  0x6d   :  { %374 = vmatpush.msra.mxu1 %v760_v25 }
  0x6f   :  { %375 = vmatpush.msra.mxu1 %v765_v27 }
  0x71   :  { %376 = vmatpush.msra.mxu1 %v770_v29 }
  0x73   :  { %377 = vmatpush.msra.mxu1 %v775_v31 }
  0xb0   :  { %v132_v36 = vpop.f32.mrf.mxu0 }
  0xb1   :  { %v198_v37 = vpop.f32.mrf.mxu1  ;;  %v133_v38 = vadd.f32 %v852_v35, %v132_v36 }
  0xb3   :  { %v201_v39 = vadd.f32 %v198_v37, %v133_v38 }
  0xb5   :  { %494 = vtanh.f32 %v201_v39 }
  0xb8   :  { %v135_v42 = vpop.f32.mrf.mxu0 }
  0xb9   :  { %v136_v43 = vadd.f32 %v852_v35, %v135_v42 }
  0xbb   :  { %v855_v40 = vpop.eup %494 }
  0xbc   :  { %222 = vmatmul.f32.vlgmr.msra.gmra.mxu3 %v855_v40 }
  0xbd   :  { %310 = vmatpush.msra.mxu3 %v705_v2  ;;  %v396_v2 = vld [vmem:[#allocation10 + $0x10] sm:$0xff] }
  0xbe   :  { %427 = vmatpush.msrb.mxu2 %v396_v2 }
  0xbf   :  { %311 = vmatpush.msra.mxu3 %v708_v3  ;;  %v91_v3 = vld [vmem:[#allocation4 + $0x20] sm:$0xff] }
  0xc0   :  { %v138_v54 = vpop.f32.mrf.mxu0  ;;  %143 = vmatmul.f32.gmra.mxu0 %v91_v3  ;;  %428 = vmatpush.msrb.mxu2 %v395_v4 }
  0xc1   :  { %312 = vmatpush.msra.mxu3 %v710_v5  ;;  %v139_v55 = vadd.f32 %v852_v35, %v138_v54  ;;  %v394_v5 = vld [vmem:[#allocation10] sm:$0xff] }
  0xc2   :  { %429 = vmatpush.msrb.mxu2 %v394_v5 }
  0xc3   :  { %313 = vmatpush.msra.mxu3 %v715_v7 }
  0xc5   :  { %314 = vmatpush.msra.mxu3 %v720_v9 }
  0xc7   :  { %315 = vmatpush.msra.mxu3 %v725_v11  ;;  %v92_v11 = vld [vmem:[#allocation4 + $0x28] sm:$0xff] }
  0xc8   :  { %v141_v6 = vpop.f32.mrf.mxu0  ;;  %146 = vmatmul.f32.gmra.mxu0 %v92_v11 }
  0xc9   :  { %316 = vmatpush.msra.mxu3 %v730_v13  ;;  %v142_v7 = vadd.f32 %v852_v35, %v141_v6 }
  0xcb   :  { %317 = vmatpush.msra.mxu3 %v735_v15 }
  0xcd   :  { %318 = vmatpush.msra.mxu3 %v740_v17  ;;  %v493_v17 = vld [vmem:[%s896_s5] ss:$0 sm:$0xff]  ;;  %s645_s5 = smov [#allocation12]  }
  0xce   :  { %s467_s18 = sshll.u32 %s645_s5, 4  ;;  %s468_s18 = int_to_ptr.vmem [resolvable:$true] %s467_s18 }
  0xcf   :  { %319 = vmatpush.msra.mxu3 %v745_v19 }
  0xd0   :  { %149 = vmatmul.f32.gmra.mxu0 %v93_v16 }
  0xd1   :  { %320 = vmatpush.msra.mxu3 %v750_v21 }
  0xd3   :  { %321 = vmatpush.msra.mxu3 %v755_v23 }
  0xd5   :  { %322 = vmatpush.msra.mxu3 %v760_v25 }
  0xd7   :  { %323 = vmatpush.msra.mxu3 %v765_v27  ;;  %v94_v27 = vld [vmem:[#allocation4 + $0x38] sm:$0xff] }
  0xd8   :  { %152 = vmatmul.f32.gmra.mxu0 %v94_v27 }
  0xd9   :  { %324 = vmatpush.msra.mxu3 %v770_v29 }
  0xdb   :  { %325 = vmatpush.msra.mxu3 %v775_v31 }
 0x13d   :  { %v144_v12 = vpop.f32.mrf.mxu0 }
 0x13e   :  { %v145_v13 = vadd.f32 %v852_v35, %v144_v12 }
 0x13f   :  { %v223_v44 = vpop.f32.mrf.mxu3 }
 0x140   :  { %v226_v45 = vadd.f32 %v223_v44, %v136_v43 }
 0x142   :  { %496 = vtanh.f32 %v226_v45 }
 0x145   :  { %v147_v28 = vpop.f32.mrf.mxu0 }
 0x146   :  { %v148_v29 = vadd.f32 %v852_v35, %v147_v28 }
 0x148   :  { %v497_v46 = vpop.eup %496 }
 0x149   :  { %248 = vmatmul.f32.vlgmr.msrb.gmra.mxu3 %v497_v46 }
 0x14d   :  { %v150_v36 = vpop.f32.mrf.mxu0 }
 0x14e   :  { %v151_v38 = vadd.f32 %v852_v35, %v150_v36 }
 0x155   :  { %v153_v37 = vpop.f32.mrf.mxu0 }
 0x156   :  { %v154_v44 = vadd.f32 %v852_v35, %v153_v37 }
 0x1cc   :  { %v249_v56 = vpop.f32.mrf.mxu3 }
 0x1cd   :  { %v252_v57 = vadd.f32 %v249_v56, %v139_v55 }
 0x1cf   :  { %498 = vtanh.f32 %v252_v57 }
 0x1d5   :  { %v499_v58 = vpop.eup %498 }
 0x1d6   :  { %274 = vmatmul.f32.vlgmr.msrb.gmra.mxu1 %v499_v58 }
 0x253   :  { %v275_v8 = vpop.f32.mrf.mxu1 }
 0x254   :  { %v278_v9 = vadd.f32 %v275_v8, %v142_v7 }
 0x256   :  { %500 = vtanh.f32 %v278_v9 }
 0x25c   :  { %v501_v10 = vpop.eup %500 }
 0x25d   :  { %300 = vmatmul.f32.vlgmr.msra.gmra.mxu2 %v501_v10 }
 0x265   :  { %430 = vmatmul.f32.vlgmr.msrb.gmra.mxu2 %v855_v40 }
 0x26d   :  { %433 = vmatmul.f32.gmra.mxu2 %v497_v46 }
 0x275   :  { %436 = vmatmul.f32.gmra.mxu2 %v499_v58 }
 0x27d   :  { %439 = vmatmul.f32.gmra.mxu2 %v501_v10 }
 0x2e0   :  { %v301_v14 = vpop.f32.mrf.mxu2 }
 0x2e1   :  { %v304_v15 = vadd.f32 %v301_v14, %v145_v13 }
 0x2e3   :  { %502 = vtanh.f32 %v304_v15 }
 0x2e8   :  { %v431_v18 = vpop.f32.mrf.mxu2 }
 0x2e9   :  { %v503_v19 = vpop.eup %502  ;;  %v432_v20 = vadd.f32 %v493_v17, %v431_v18 }
 0x2ea   :  { %326 = vmatmul.f32.vlgmr.msra.gmra.mxu3 %v503_v19  ;;  %442 = vmatmul.f32.gmra.mxu2 %v503_v19 }
 0x2eb   :  { %455 = vst [vmem:[#allocation12] sm:$0xff] %v432_v20 }
 0x2f0   :  { %v434_v21 = vpop.f32.mrf.mxu2 }
 0x2f1   :  { %v435_v22 = vadd.f32 %v493_v17, %v434_v21 }
 0x2f3   :  { %456 = vst [vmem:[#allocation12 + $0x8] sm:$0xff] %v435_v22 }
 0x2f8   :  { %v437_v23 = vpop.f32.mrf.mxu2 }
 0x2f9   :  { %v438_v24 = vadd.f32 %v493_v17, %v437_v23 }
 0x2fb   :  { %457 = vst [vmem:[#allocation12 + $0x10] sm:$0xff] %v438_v24 }
 0x300   :  { %v440_v25 = vpop.f32.mrf.mxu2 }
 0x301   :  { %v441_v26 = vadd.f32 %v493_v17, %v440_v25 }
 0x303   :  { %458 = vst [vmem:[#allocation12 + $0x18] sm:$0xff] %v441_v26 }
 0x36d   :  { %v327_v30 = vpop.f32.mrf.mxu3  ;;  %v443_v31 = vpop.f32.mrf.mxu2 }
 0x36e   :  { %v330_v32 = vadd.f32 %v327_v30, %v148_v29  ;;  %v444_v33 = vadd.f32 %v493_v17, %v443_v31 }
 0x370   :  { %504 = vtanh.f32 %v330_v32  ;;  %459 = vst [vmem:[#allocation12 + $0x20] sm:$0xff] %v444_v33 }
 0x376   :  { %v505_v34 = vpop.eup %504 }
 0x377   :  { %352 = vmatmul.f32.vlgmr.msrb.gmra.mxu0 %v505_v34  ;;  %445 = vmatmul.f32.gmra.mxu2 %v505_v34 }
 0x3f4   :  { %v353_v39 = vpop.f32.mrf.mxu0 }
 0x3f5   :  { %v356_v40 = vadd.f32 %v353_v39, %v151_v38 }
 0x3f7   :  { %506 = vtanh.f32 %v356_v40 }
 0x3fa   :  { %v446_v41 = vpop.f32.mrf.mxu2 }
 0x3fb   :  { %v447_v42 = vadd.f32 %v493_v17, %v446_v41 }
 0x3fd   :  { %v507_v43 = vpop.eup %506  ;;  %460 = vst [vmem:[#allocation12 + $0x28] sm:$0xff] %v447_v42 }
 0x3fe   :  { %378 = vmatmul.f32.vlgmr.msra.gmra.mxu1 %v507_v43  ;;  %448 = vmatmul.f32.gmra.mxu2 %v507_v43 }
 0x47b   :  { %v379_v45 = vpop.f32.mrf.mxu1 }
 0x47c   :  { %v382_v46 = vadd.f32 %v379_v45, %v154_v44 }
 0x47e   :  { %508 = vtanh.f32 %v382_v46 }
 0x481   :  { %v449_v47 = vpop.f32.mrf.mxu2 }
 0x482   :  { %v450_v48 = vadd.f32 %v493_v17, %v449_v47 }
 0x484   :  { %v509_v49 = vpop.eup %508  ;;  %461 = vst [vmem:[#allocation12 + $0x30] sm:$0xff] %v450_v48 }
 0x485   :  { %451 = vmatmul.f32.gmra.mxu2 %v509_v49 }
 0x508   :  { %v452_v50 = vpop.f32.mrf.mxu2 }
 0x509   :  { %v453_v51 = vadd.f32 %v493_v17, %v452_v50 }
 0x50b   :  { %462 = vst [vmem:[#allocation12 + $0x38] sm:$0xff] %v453_v51 }
 0x50c   :  { %475 = dma.vmem_to_hbm [thread:$0]  %s468_s18, 1024, %s470_s21, [#allocation6], %s639_s29, %s639_s29, %s640_s30  }
 0x50d   :  { %636 = dma.done.wait [#allocation6], 1024  }
 0x50e   :  { %637 = vsyncadd [#allocation6], 4294966272 }
 0x50f   :  { %480 = vsyncpa [#allocation5], 1 }
 0x510   :  { %481 = vsyncpa [#allocation8], 1 }
 0x511   :  { %482 = vsyncpa [#allocation11], 1 }
 0x512   :  { %483 = vsyncpa [#allocation6], 1 }

</bundles_post_ra>
